<compile_context>
chip_gen: v6e
topology: v6e:2x2x1
jax: 0.10.0
libtpu: 0.0.40
codegen_flags: <defaults>
</compile_context>

<pallas_src>
import functools

import jax
import jax.numpy as jnp
from jax import lax
from jax.experimental import pallas as pl
from jax.experimental.pallas import tpu as pltpu

_LANE = 128
_SENTINEL = 1.0e18  # padded-y coordinate: squared distance ~2e36 (finite), never wins a min


def _chamfer_kernel(x_ref, yt_ref, o_ref, rowmin_ref, colsum_ref, *,
                    loss_weight, p2_total, needs_mask):
    """Grid step (g, k): batch sub-block g, P2 chunk k.

    x_ref      : (TB, P1, D)    f32 VMEM
    yt_ref     : (TB, D, TP2)   f32 VMEM  (y pre-transposed: points on lanes)
    o_ref      : (TB, 1, 1)     f32 VMEM block, resident across the k axis
    rowmin_ref : (TB, P1, 128)  f32 scratch: lane-group partial min_j |x_i - y_j|^2
    colsum_ref : (TB, 1, 128)   f32 scratch: lane-partial sum_j min_i |x_i - y_j|
    """
    k = pl.program_id(1)
    nk = pl.num_programs(1)
    TB, P1, D = x_ref.shape
    TP2 = yt_ref.shape[2]
    G = TP2 // _LANE  # lane groups per chunk

    @pl.when(k == 0)
    def _init():
        rowmin_ref[...] = jnp.full(rowmin_ref.shape, jnp.inf, jnp.float32)
        colsum_ref[...] = jnp.zeros(colsum_ref.shape, jnp.float32)

    if needs_mask:
        # Only a cheap (1, TP2) column-validity mask is needed; the (P1, TP2)
        # tile itself is protected by the sentinel padding of y in the wrapper.
        col_ids = k * TP2 + lax.broadcasted_iota(jnp.int32, (1, TP2), 1)
        valid = col_ids < p2_total  # (1, TP2) bool
    else:
        valid = None

    def body(i, carry):
        x_i = x_ref[i]        # (P1, D)
        yt_i = yt_ref[i]      # (D, TP2)

        # Pairwise squared distances, coordinate by coordinate (pure VPU; D tiny).
        # Initialize acc from the d=0 term instead of a zeros tile.
        diff = x_i[:, 0:1] - yt_i[0:1, :]                 # (P1, TP2)
        acc = diff * diff
        for d in range(1, D):
            diff = x_i[:, d:d + 1] - yt_i[d:d + 1, :]
            acc = acc + diff * diff

        # Row-min path: fold TP2 lanes to 128 lane-partial mins (elementwise VPU);
        # the cross-lane min and the sqrt are deferred to the finalize step.
        lane_min = acc[:, 0:_LANE]
        for g in range(1, G):
            lane_min = jnp.minimum(lane_min, acc[:, g * _LANE:(g + 1) * _LANE])
        rowmin_ref[i] = jnp.minimum(rowmin_ref[i], lane_min)

        # Column path: min over P1, sqrt only the reduced (1, TP2) row, mask
        # padded columns, fold lanes into 128 partial sums (VPU adds only).
        col_min = jnp.min(acc, axis=0, keepdims=True)     # (1, TP2) squared
        col_dist = jnp.sqrt(col_min)
        if valid is not None:
            col_dist = jnp.where(valid, col_dist, 0.0)
        lane_sum = col_dist[:, 0:_LANE]
        for g in range(1, G):
            lane_sum = lane_sum + col_dist[:, g * _LANE:(g + 1) * _LANE]
        colsum_ref[i] = colsum_ref[i] + lane_sum
        return carry

    lax.fori_loop(0, TB, body, 0)

    @pl.when(k == nk - 1)
    def _finalize():
        def fin(i, carry):
            rmin = jnp.min(rowmin_ref[i], axis=1, keepdims=True)          # (P1, 1) squared
            d1 = jnp.sum(jnp.sqrt(rmin), axis=0, keepdims=True) / float(P1)   # (1, 1)
            d2 = jnp.sum(colsum_ref[i], axis=1, keepdims=True) / float(p2_total)
            o_ref[i] = ((d1 + d2) * (0.5 * loss_weight)).astype(o_ref.dtype)
            return carry
        lax.fori_loop(0, TB, fin, 0)


def _round_up(x, m):
    return ((x + m - 1) // m) * m


def _vmem_capacity_bytes():
    try:
        return int(pltpu.get_tpu_info().vmem_capacity_bytes)
    except Exception:
        return 64 << 20  # conservative default (v7x per-core VMEM)


def _vmem_estimate(tb, p1, tp2):
    f = 4
    x_blk = 2 * tb * p1 * _LANE * f      # x block: D lane-padded to 128, double-buffered
    yt_blk = 2 * tb * 8 * tp2 * f        # y^T block: D sublane-padded to 8, double-buffered
    rowmin = tb * p1 * _LANE * f
    colsum = tb * 8 * _LANE * f
    live = 3 * p1 * tp2 * f              # acc + diff + headroom inside the fori body
    return x_blk + yt_blk + rowmin + colsum + live


def _choose_tiling(B, P1, P2):
    cap = max(16 << 20, min(_vmem_capacity_bytes(), 128 << 20))
    budget = (2 * cap) // 5                                    # ~40% of VMEM for blocks + scratch
    # Capped at 56 MiB so the limit stays below physical VMEM on every generation.
    vmem_limit = max(32 << 20, min(int(budget * 1.6), 56 << 20))

    # P2 chunk: multiple of 128, as large as the budget allows (fewer chunks =>
    # fewer per-chunk reductions / sqrt passes / grid-step overheads).
    p2_lane = _round_up(P2, _LANE)
    tp2 = min(p2_lane, 2048)
    while tp2 > _LANE and _vmem_estimate(1, P1, tp2) > budget:
        tp2 -= _LANE

    # Batch sub-block: largest that fits the budget, capped at ceil(B/2) so the
    # parallel g axis has >= 2 blocks (keeps both TensorCores busy on dual-core
    # parts), then padding-aware: maximize B / round_up(B, tb), ties -> larger tb.
    tb_fit = 1
    for tb in range(1, min(8, B) + 1):
        if _vmem_estimate(tb, P1, tp2) <= budget:
            tb_fit = tb
        else:
            break
    tb_cap = max(1, min(tb_fit, (B + 1) // 2))
    best_tb, best_eff = 1, 0.0
    for tb in range(1, tb_cap + 1):
        eff = B / float(_round_up(B, tb))
        if eff > best_eff + 1e-9 or (abs(eff - best_eff) <= 1e-9 and tb > best_tb):
            best_tb, best_eff = tb, eff
    return best_tb, tp2, vmem_limit


def _chamfer_batched(x, y, loss_weight):
    """x: (B, P1, D) f32, y: (B, P2, D) f32 -> (B,) f32 chamfer distances."""
    B, P1, D = x.shape
    P2 = y.shape[1]

    TB, TP2, vmem_limit = _choose_tiling(B, P1, P2)

    B_pad = _round_up(B, TB)
    if B_pad != B:
        x = jnp.pad(x, ((0, B_pad - B), (0, 0), (0, 0)))
        y = jnp.pad(y, ((0, B_pad - B), (0, 0), (0, 0)))

    P2_pad = _round_up(P2, TP2)
    needs_mask = P2_pad != P2
    if needs_mask:
        # Sentinel padding: padded columns can never win a row-min, so no
        # (P1, TP2) mask is needed inside the kernel.
        y = jnp.pad(y, ((0, 0), (0, P2_pad - P2), (0, 0)),
                    constant_values=_SENTINEL)

    yt = jnp.transpose(y, (0, 2, 1))        # (B_pad, D, P2_pad): points on lanes
    nb = B_pad // TB
    nk = P2_pad // TP2

    out = pl.pallas_call(
        functools.partial(_chamfer_kernel, loss_weight=float(loss_weight),
                          p2_total=P2, needs_mask=needs_mask),
        out_shape=jax.ShapeDtypeStruct((B_pad, 1, 1), jnp.float32),
        grid_spec=pltpu.PrefetchScalarGridSpec(
            num_scalar_prefetch=0,
            grid=(nb, nk),
            in_specs=[
                pl.BlockSpec((TB, P1, D), lambda g, k: (g, 0, 0)),
                pl.BlockSpec((TB, D, TP2), lambda g, k: (g, 0, k)),
            ],
            # Per-batch-block output, resident across the (last) reduction axis.
            out_specs=pl.BlockSpec((TB, 1, 1), lambda g, k: (g, 0, 0)),
            scratch_shapes=[
                pltpu.VMEM((TB, P1, _LANE), jnp.float32),   # lane-partial row mins (squared)
                pltpu.VMEM((TB, 1, _LANE), jnp.float32),    # lane-partial column-dist sums
            ],
        ),
        compiler_params=pltpu.CompilerParams(
            dimension_semantics=("parallel", "arbitrary"),
            vmem_limit_bytes=vmem_limit),
    )(x, yt)
    return out[:B, 0, 0]


def chamfer_loss_2d(point_set_1, point_set_2, loss_weight=1.0, eps=1e-12):
    """JAX/Pallas equivalent of ChamferLoss2D(use_cuda=False).forward."""
    del eps  # eps only appears on the use_cuda=True path of the reference
    assert point_set_1.ndim == point_set_2.ndim
    assert point_set_1.shape[-1] == point_set_2.shape[-1]
    P1, D = point_set_1.shape[-2], point_set_1.shape[-1]
    P2 = point_set_2.shape[-2]
    batch_shape = point_set_1.shape[:-2]

    x = point_set_1.reshape((-1, P1, D)).astype(jnp.float32)
    y = point_set_2.reshape((-1, P2, D)).astype(jnp.float32)
    if x.shape[0] == 0:
        # matches `if x.shape[0] == 0: return x.sum()` in the reference
        return jnp.zeros(batch_shape, jnp.float32) * loss_weight

    dist = _chamfer_batched(x, y, loss_weight)   # (B,), loss_weight applied
    return dist.reshape(batch_shape)


def _chamfer_ref(x, y, loss_weight=1.0):
    """Pure-JAX reference mirroring the PyTorch module, for validation."""
    xc = x[..., :, None, :].astype(jnp.float32)
    yl = y[..., None, :, :].astype(jnp.float32)
    c = jnp.sqrt(jnp.sum((xc - yl) ** 2, axis=-1))
    d1 = jnp.min(c, axis=-1).mean(axis=-1)
    d2 = jnp.min(c, axis=-2).mean(axis=-1)
    return (d1 + d2) / 2.0 * loss_weight


if __name__ == "__main__":
    key = jax.random.PRNGKey(0)
    k1, k2, k3, k4, k5, k6, k7, k8 = jax.random.split(key, 8)

    # 3-D case: [bs, num_points, 2] -> output [bs]  (P2=48 pads to one 128-lane chunk)
    ps1 = jax.random.normal(k1, (2, 64, 2), dtype=jnp.float32)
    ps2 = jax.random.normal(k2, (2, 48, 2), dtype=jnp.float32)
    out3 = jax.block_until_ready(chamfer_loss_2d(ps1, ps2))

    # >3-D case: [bs, h, num_points, 2] -> output [bs, h]
    ps1h = jax.random.normal(k3, (2, 3, 32, 2), dtype=jnp.float32)
    ps2h = jax.random.normal(k4, (2, 3, 24, 2), dtype=jnp.float32)
    outh = jax.block_until_ready(chamfer_loss_2d(ps1h, ps2h))

    # Batch-tiling case (B=10 -> TB=5, no padding waste) with a P2 tail mask.
    ps1c = jax.random.normal(k5, (10, 16, 2), dtype=jnp.float32)
    ps2c = jax.random.normal(k6, (10, 600, 2), dtype=jnp.float32)
    outc = jax.block_until_ready(chamfer_loss_2d(ps1c, ps2c, loss_weight=2.0))

    # P2-chunking case (P2=2200 > 2048 -> nk >= 2), exercising the running
    # lane-partial row-min / column-sum carry across chunks.
    ps1d = jax.random.normal(k7, (3, 40, 2), dtype=jnp.float32)
    ps2d = jax.random.normal(k8, (3, 2200, 2), dtype=jnp.float32)
    outd = jax.block_until_ready(chamfer_loss_2d(ps1d, ps2d, loss_weight=0.5))

    assert out3.shape == (2,), out3.shape
    assert outh.shape == (2, 3), outh.shape
    assert outc.shape == (10,), outc.shape
    assert outd.shape == (3,), outd.shape
    assert jnp.allclose(out3, _chamfer_ref(ps1, ps2), atol=1e-5, rtol=1e-5)
    assert jnp.allclose(outh, _chamfer_ref(ps1h, ps2h), atol=1e-5, rtol=1e-5)
    assert jnp.allclose(outc, _chamfer_ref(ps1c, ps2c, 2.0), atol=1e-5, rtol=1e-5)
    # Slightly looser: ~2200-term f32 sums accumulate in a different order than XLA's.
    assert jnp.allclose(outd, _chamfer_ref(ps1d, ps2d, 0.5), atol=1e-4, rtol=1e-4)

    print("KERNEL_OK")
</pallas_src>

<mosaic_0001>
module attributes {stable_mosaic.version = 11 : i64} {
  func.func @_chamfer_kernel(%arg0: i32, %arg1: i32, %arg2: memref<1x64x2xf32, #tpu.memory_space<vmem>>, %arg3: memref<1x2x128xf32, #tpu.memory_space<vmem>>, %arg4: memref<1x1x1xf32, #tpu.memory_space<vmem>>, %arg5: memref<1x64x128xf32, #tpu.memory_space<vmem>>, %arg6: memref<1x1x128xf32, #tpu.memory_space<vmem>>) attributes {dimension_semantics = [#tpu.dimension_semantics<parallel>, #tpu.dimension_semantics<arbitrary>], iteration_bounds = array<i64: 2, 1>, scalar_prefetch = 0 : i64, scratch_operands = 2 : i64, tpu.core_type = #tpu.core_type<tc>, window_params = [{transform_indices = @transform_0, window_bounds = array<i64: 1, 64, 2>}, {transform_indices = @transform_1, window_bounds = array<i64: 1, 2, 128>}, {transform_indices = @transform_2, window_bounds = array<i64: 1, 1, 1>}]} {
    %c0_i32 = arith.constant 0 : i32
    %0 = arith.cmpi eq, %arg1, %c0_i32 : i32
    %1 = arith.extui %0 : i1 to i32
    %c0_i32_0 = arith.constant 0 : i32
    %2 = arith.cmpi ne, %1, %c0_i32_0 : i32
    scf.if %2 {
      %cst_16 = arith.constant 0x7F800000 : f32
      %52 = vector.broadcast %cst_16 : f32 to vector<1x64x128xf32>
      %c0_17 = arith.constant 0 : index
      %c0_18 = arith.constant 0 : index
      %c0_19 = arith.constant 0 : index
      %53 = vector.load %arg5[%c0_17, %c0_18, %c0_19] : memref<1x64x128xf32, #tpu.memory_space<vmem>>, vector<1x64x128xf32>
      tpu.vector_store %arg5[%c0_17, %c0_18, %c0_19], %52 {strides = array<i32>} : memref<1x64x128xf32, #tpu.memory_space<vmem>>, vector<1x64x128xf32>,
      %cst_20 = arith.constant 0.000000e+00 : f32
      %54 = vector.broadcast %cst_20 : f32 to vector<1x1x128xf32>
      %c0_21 = arith.constant 0 : index
      %c0_22 = arith.constant 0 : index
      %c0_23 = arith.constant 0 : index
      %55 = vector.load %arg6[%c0_21, %c0_22, %c0_23] : memref<1x1x128xf32, #tpu.memory_space<vmem>>, vector<1x1x128xf32>
      tpu.vector_store %arg6[%c0_21, %c0_22, %c0_23], %54 {strides = array<i32>} : memref<1x1x128xf32, #tpu.memory_space<vmem>>, vector<1x1x128xf32>,
    } else {
    }
    %c128_i32 = arith.constant 128 : i32
    %3 = arith.muli %arg1, %c128_i32 : i32
    %4 = tpu.iota {dimensions = array<i32: 1>} : vector<1x128xi32>
    %5 = vector.broadcast %3 : i32 to vector<1x128xi32>
    %6 = arith.addi %5, %4 : vector<1x128xi32>
    %c48_i32 = arith.constant 48 : i32
    %7 = vector.broadcast %c48_i32 : i32 to vector<1x128xi32>
    %8 = arith.cmpi slt, %6, %7 : vector<1x128xi32>
    %c0_i32_1 = arith.constant 0 : i32
    %9 = arith.index_cast %c0_i32_1 : i32 to index
    %c0 = arith.constant 0 : index
    %c0_2 = arith.constant 0 : index
    %10 = vector.load %arg2[%9, %c0, %c0_2] : memref<1x64x2xf32, #tpu.memory_space<vmem>>, vector<1x64x2xf32>
    %11 = vector.shape_cast %10 : vector<1x64x2xf32> to vector<64x2xf32>
    %12 = arith.index_cast %c0_i32_1 : i32 to index
    %c0_3 = arith.constant 0 : index
    %c0_4 = arith.constant 0 : index
    %13 = vector.load %arg3[%12, %c0_3, %c0_4] : memref<1x2x128xf32, #tpu.memory_space<vmem>>, vector<1x2x128xf32>
    %14 = vector.shape_cast %13 : vector<1x2x128xf32> to vector<2x128xf32>
    %15 = vector.extract_strided_slice %11 {offsets = [0, 0], sizes = [64, 1], strides = [1, 1]} : vector<64x2xf32> to vector<64x1xf32>
    %16 = vector.extract_strided_slice %14 {offsets = [0, 0], sizes = [1, 128], strides = [1, 1]} : vector<2x128xf32> to vector<1x128xf32>
    %17 = vector.broadcast %15 : vector<64x1xf32> to vector<64x128xf32>
    %18 = vector.broadcast %16 : vector<1x128xf32> to vector<64x128xf32>
    %19 = arith.subf %17, %18 : vector<64x128xf32>
    %20 = arith.mulf %19, %19 : vector<64x128xf32>
    %21 = vector.extract_strided_slice %11 {offsets = [0, 1], sizes = [64, 1], strides = [1, 1]} : vector<64x2xf32> to vector<64x1xf32>
    %22 = vector.extract_strided_slice %14 {offsets = [1, 0], sizes = [1, 128], strides = [1, 1]} : vector<2x128xf32> to vector<1x128xf32>
    %23 = vector.broadcast %21 : vector<64x1xf32> to vector<64x128xf32>
    %24 = vector.broadcast %22 : vector<1x128xf32> to vector<64x128xf32>
    %25 = arith.subf %23, %24 : vector<64x128xf32>
    %26 = arith.mulf %25, %25 : vector<64x128xf32>
    %27 = arith.addf %20, %26 : vector<64x128xf32>
    %28 = arith.index_cast %c0_i32_1 : i32 to index
    %c0_5 = arith.constant 0 : index
    %c0_6 = arith.constant 0 : index
    %29 = vector.load %arg5[%28, %c0_5, %c0_6] : memref<1x64x128xf32, #tpu.memory_space<vmem>>, vector<1x64x128xf32>
    %30 = vector.shape_cast %29 : vector<1x64x128xf32> to vector<64x128xf32>
    %31 = arith.minimumf %30, %27 : vector<64x128xf32>
    %32 = arith.index_cast %c0_i32_1 : i32 to index
    %c0_7 = arith.constant 0 : index
    %c0_8 = arith.constant 0 : index
    %33 = vector.load %arg5[%32, %c0_7, %c0_8] : memref<1x64x128xf32, #tpu.memory_space<vmem>>, vector<1x64x128xf32>
    %34 = vector.shape_cast %33 : vector<1x64x128xf32> to vector<64x128xf32>
    %35 = vector.shape_cast %31 : vector<64x128xf32> to vector<1x64x128xf32>
    tpu.vector_store %arg5[%32, %c0_7, %c0_8], %35 {strides = array<i32>} : memref<1x64x128xf32, #tpu.memory_space<vmem>>, vector<1x64x128xf32>,
    %cst = arith.constant dense<0x7F800000> : vector<128xf32>
    %36 = vector.multi_reduction <minimumf>, %27, %cst [0] : vector<64x128xf32> to vector<128xf32>
    %37 = vector.shape_cast %36 : vector<128xf32> to vector<1x128xf32>
    %38 = math.sqrt %37 : vector<1x128xf32>
    %cst_9 = arith.constant 0.000000e+00 : f32
    %39 = vector.broadcast %cst_9 : f32 to vector<1x128xf32>
    %40 = arith.select %8, %38, %39 : vector<1x128xi1>, vector<1x128xf32>
    %41 = arith.index_cast %c0_i32_1 : i32 to index
    %c0_10 = arith.constant 0 : index
    %c0_11 = arith.constant 0 : index
    %42 = vector.load %arg6[%41, %c0_10, %c0_11] : memref<1x1x128xf32, #tpu.memory_space<vmem>>, vector<1x1x128xf32>
    %43 = vector.shape_cast %42 : vector<1x1x128xf32> to vector<1x128xf32>
    %44 = arith.addf %43, %40 : vector<1x128xf32>
    %45 = arith.index_cast %c0_i32_1 : i32 to index
    %c0_12 = arith.constant 0 : index
    %c0_13 = arith.constant 0 : index
    %46 = vector.load %arg6[%45, %c0_12, %c0_13] : memref<1x1x128xf32, #tpu.memory_space<vmem>>, vector<1x1x128xf32>
    %47 = vector.shape_cast %46 : vector<1x1x128xf32> to vector<1x128xf32>
    %48 = vector.shape_cast %44 : vector<1x128xf32> to vector<1x1x128xf32>
    tpu.vector_store %arg6[%45, %c0_12, %c0_13], %48 {strides = array<i32>} : memref<1x1x128xf32, #tpu.memory_space<vmem>>, vector<1x1x128xf32>,
    %c1_i32 = arith.constant 1 : i32
    %c0_i32_14 = arith.constant 0 : i32
    %49 = arith.cmpi eq, %arg1, %c0_i32_14 : i32
    %50 = arith.extui %49 : i1 to i32
    %c0_i32_15 = arith.constant 0 : i32
    %51 = arith.cmpi ne, %50, %c0_i32_15 : i32
    scf.if %51 {
      %c0_i32_16 = arith.constant 0 : i32
      %52 = arith.index_cast %c0_i32_16 : i32 to index
      %c0_17 = arith.constant 0 : index
      %c0_18 = arith.constant 0 : index
      %53 = vector.load %arg5[%52, %c0_17, %c0_18] : memref<1x64x128xf32, #tpu.memory_space<vmem>>, vector<1x64x128xf32>
      %54 = vector.shape_cast %53 : vector<1x64x128xf32> to vector<64x128xf32>
      %cst_19 = arith.constant dense<0x7F800000> : vector<64xf32>
      %55 = vector.multi_reduction <minimumf>, %54, %cst_19 [1] : vector<64x128xf32> to vector<64xf32>
      %56 = vector.shape_cast %55 : vector<64xf32> to vector<64x1xf32>
      %57 = math.sqrt %56 : vector<64x1xf32>
      %cst_20 = arith.constant dense<0.000000e+00> : vector<1xf32>
      %58 = vector.multi_reduction <add>, %57, %cst_20 [0] : vector<64x1xf32> to vector<1xf32>
      %59 = vector.shape_cast %58 : vector<1xf32> to vector<1x1xf32>
      %cst_21 = arith.constant 6.400000e+01 : f32
      %60 = vector.broadcast %cst_21 : f32 to vector<1x1xf32>
      %61 = arith.divf %59, %60 : vector<1x1xf32>
      %62 = arith.index_cast %c0_i32_16 : i32 to index
      %c0_22 = arith.constant 0 : index
      %c0_23 = arith.constant 0 : index
      %63 = vector.load %arg6[%62, %c0_22, %c0_23] : memref<1x1x128xf32, #tpu.memory_space<vmem>>, vector<1x1x128xf32>
      %64 = vector.shape_cast %63 : vector<1x1x128xf32> to vector<1x128xf32>
      %cst_24 = arith.constant dense<0.000000e+00> : vector<1xf32>
      %65 = vector.multi_reduction <add>, %64, %cst_24 [1] : vector<1x128xf32> to vector<1xf32>
      %66 = vector.shape_cast %65 : vector<1xf32> to vector<1x1xf32>
      %cst_25 = arith.constant 4.800000e+01 : f32
      %67 = vector.broadcast %cst_25 : f32 to vector<1x1xf32>
      %68 = arith.divf %66, %67 : vector<1x1xf32>
      %69 = arith.addf %61, %68 : vector<1x1xf32>
      %cst_26 = arith.constant 5.000000e-01 : f32
      %70 = vector.broadcast %cst_26 : f32 to vector<1x1xf32>
      %71 = arith.mulf %69, %70 : vector<1x1xf32>
      %72 = arith.index_cast %c0_i32_16 : i32 to index
      %c0_27 = arith.constant 0 : index
      %c0_28 = arith.constant 0 : index
      %73 = vector.load %arg4[%72, %c0_27, %c0_28] : memref<1x1x1xf32, #tpu.memory_space<vmem>>, vector<1x1x1xf32>
      %74 = vector.shape_cast %73 : vector<1x1x1xf32> to vector<1x1xf32>
      %75 = vector.shape_cast %71 : vector<1x1xf32> to vector<1x1x1xf32>
      tpu.vector_store %arg4[%72, %c0_27, %c0_28], %75 {strides = array<i32>} : memref<1x1x1xf32, #tpu.memory_space<vmem>>, vector<1x1x1xf32>,
      %c1_i32_29 = arith.constant 1 : i32
    } else {
    }
    return
  }
  func.func @transform_0(%arg0: i32, %arg1: i32) -> (i32, i32, i32) {
    %c0_i32 = arith.constant 0 : i32
    %c0_i32_0 = arith.constant 0 : i32
    %c0_i32_1 = arith.constant 0 : i32
    return %arg0, %c0_i32, %c0_i32_0 : i32, i32, i32
  }
  func.func @transform_1(%arg0: i32, %arg1: i32) -> (i32, i32, i32) {
    %c0_i32 = arith.constant 0 : i32
    %c0_i32_0 = arith.constant 0 : i32
    return %arg0, %c0_i32, %arg1 : i32, i32, i32
  }
  func.func @transform_2(%arg0: i32, %arg1: i32) -> (i32, i32, i32) {
    %c0_i32 = arith.constant 0 : i32
    %c0_i32_0 = arith.constant 0 : i32
    %c0_i32_1 = arith.constant 0 : i32
    return %arg0, %c0_i32, %c0_i32_0 : i32, i32, i32
  }
}

</mosaic_0001>

<bundles_post_ra>
// kernel: tpu_custom_call.1
= control target key start
LH: loop header
LB: loop body
LE: loop exit
PB: predicated region body
PF: predicated region fallthrough
CT: control target
= control target key end

     0   :  { %s657_s9 = smov 0   ;;  %s659_s10 = smov 0   ;;  %s716_s0 = inlined_call_operand.vmem [shape: f32[2,64,2], index: 0, kind: input, shape index: {}]   ;;  %s717_s1 = inlined_call_operand.vmem [shape: f32[2,2,128], index: 1, kind: input, shape index: {}]   ;;  %s718_s2 = inlined_call_operand.vmem [shape: f32[2,1,1], index: 2, kind: output, shape index: {}]  }
   0x1   :  { %s661_s11 = smov 0  }
   0x2 LB: > { %s24_s12 = sadd.s32 1, %s633_s10  ;;  %p559_p0 = scmp.ge.s32.totalorder %s637_s11, 1  ;;  %s637_s11 = sphi %s661_s11, %s12_s11   ;;  %s633_s10 = sphi %s659_s10, %s720_s10   ;;  %s629_s9 = sphi %s657_s9, %s719_s9  }
   0x3   : > { %p26_p1 = scmp.ge.s32.totalorder %s24_s12, 2  ;;  %p138_p2 = scmp.lt.s32.totalorder %s637_s11, 3 }
   0x5   : > { %s722_s12 = smov (%p26_p1, %s24_s12), 0  ;;  %p139_p3 = pnand %p559_p0, %p138_p2 }
   0x6   : > { %p165_p4 = scmp.lt.s32.totalorder (!%p139_p3), %s629_s9, 1 }
   0x7   : > { %142 = sbr.rel (%p139_p3) target bundleno = 368 (0x170), region = 28 }
   0xc   : > { %v639_v0 = vmov 0   ;;  %s724_s9 = smov (!%p165_p4, %s629_s9), 1  ;;  %v640_v9 = vmov 1   ;;  %v641_v10 = vmov 0.0   ;;  %v194_v11 = vlaneseq }
   0xd   : > { %594 = vset.pattern.permute.xlu1 %v639_v0  ;;  %593 = vset.pattern.permute.xlu0 %v639_v0  ;;  %s565_s13 = sshll.u32 %s724_s9, 6  ;;  %192 = vst [vmem:[#allocation3] sm:$0x1] %v641_v10  ;;  %s562_s17 = sshll.u32 %s724_s9, 1  ;;  %vm475_vm3 = vcmask 1040384  }
   0xe   : > { %s169_s16 = scalar_lea.vmem %s716_s0, %s565_s13  ;;  %v249_v14 = vshrl.u32 %v194_v11, 7  ;;  %s176_s20 = scalar_lea.vmem %s717_s1, %s562_s17 }
   0xf   : > { %v201_v1 = vld [vmem:[%s169_s16 + $0x10] sm:$0xff]  ;;  %v199_v2 = vld [vmem:[%s169_s16] sm:$0xff]  ;;  %v202_v3 = vld [vmem:[%s169_s16 + $0x18] sm:$0xff]  ;;  %s179_s23 = scalar_lea.vmem %s718_s2, %s724_s9 }
  0x10   : > { %220 = vperm.xlu1 %594, %v201_v1   ;;  %210 = vperm.xlu0 %593, %v199_v2   ;;  %v200_v4 = vld [vmem:[%s169_s16 + $0x8] sm:$0xff]  ;;  %v203_v6 = vld [vmem:[%s169_s16 + $0x20] sm:$0xff]  ;;  %v206_v7 = vld [vmem:[%s169_s16 + $0x38] sm:$0xff]  ;;  %v250_v17 = vsub.s32 0, %v249_v14  ;;  %v302_v21 = vsub.s32 1, %v249_v14 }
  0x11   : > { %v204_v5 = vld [vmem:[%s169_s16 + $0x28] sm:$0xff]  ;;  %v205_v8 = vld [vmem:[%s169_s16 + $0x30] sm:$0xff]  ;;  %v207_v18 = vld [vmem:[%s176_s20] sm:$0x3] }
  0x12   : > { %v251_v22 = vrot.slane %v207_v18, %v250_v17  ;;  %v303_v25 = vrot.slane %v207_v18, %v302_v21 }
  0x14   : > { %225 = vperm.xlu1 %594, %v202_v3   ;;  %215 = vperm.xlu0 %593, %v200_v4  }
  0x18   : > { %235 = vperm.xlu1 %594, %v204_v5   ;;  %230 = vperm.xlu0 %593, %v203_v6  }
  0x1c   : > { %245 = vperm.xlu1 %594, %v206_v7   ;;  %240 = vperm.xlu0 %593, %v205_v8  }
  0x20   : > { %596 = vset.pattern.permute.xlu1 %v640_v9  ;;  %595 = vset.pattern.permute.xlu0 %v640_v9 }
  0x21   : > { %273 = vperm.xlu1 %596, %v200_v4   ;;  %269 = vperm.xlu0 %595, %v199_v2  }
  0x25   : > { %277 = vperm.xlu1 %596, %v201_v1   ;;  %281 = vperm.xlu0 %595, %v202_v3  }
  0x29   : > { %285 = vperm.xlu1 %596, %v203_v6   ;;  %289 = vperm.xlu0 %595, %v204_v5  }
  0x2d   : > { %293 = vperm.xlu1 %596, %v205_v8   ;;  %297 = vperm.xlu0 %595, %v206_v7  }
  0x8b   : > { %v221_v12 = vpop.permute.xlu1 %220  ;;  %v211_v13 = vpop.permute.xlu0 %210 }
  0x8c   : > { %v252_v26 = vsub.f32 %v211_v13, %v251_v22  ;;  %v254_v32 = vsub.f32 %v221_v12, %v251_v22 }
  0x8e   : > { %v260_v33 = vmul.f32 %v252_v26, %v252_v26  ;;  %v262_v44 = vmul.f32 %v254_v32, %v254_v32 }
  0x8f   : > { %v226_v15 = vpop.permute.xlu1 %225  ;;  %v216_v16 = vpop.permute.xlu0 %215 }
  0x90   : > { %v253_v27 = vsub.f32 %v216_v16, %v251_v22  ;;  %v255_v34 = vsub.f32 %v226_v15, %v251_v22 }
  0x92   : > { %v261_v35 = vmul.f32 %v253_v27, %v253_v27  ;;  %v263_v47 = vmul.f32 %v255_v34, %v255_v34 }
  0x93   : > { %v236_v19 = vpop.permute.xlu1 %235  ;;  %v231_v20 = vpop.permute.xlu0 %230 }
  0x94   : > { %v257_v45 = vsub.f32 %v236_v19, %v251_v22  ;;  %v256_v46 = vsub.f32 %v231_v20, %v251_v22 }
  0x96   : > { %v265_v56 = vmul.f32 %v257_v45, %v257_v45  ;;  %v264_v57 = vmul.f32 %v256_v46, %v256_v46 }
  0x97   : > { %v246_v23 = vpop.permute.xlu1 %245  ;;  %v241_v24 = vpop.permute.xlu0 %240 }
  0x98   : > { %v259_v58 = vsub.f32 %v246_v23, %v251_v22  ;;  %v258_v59 = vsub.f32 %v241_v24, %v251_v22  ;;  %v195_v24 = vand.u32 127, %v194_v11 }
  0x9a   : > { %v267_v4 = vmul.f32 %v259_v58, %v259_v58  ;;  %v266_v5 = vmul.f32 %v258_v59, %v258_v59  ;;  %vm198_vm0 = vcmp.lt.s32.totalorder %v195_v24, 48 }
  0x9c   : > { %v274_v28 = vpop.permute.xlu1 %273  ;;  %v270_v29 = vpop.permute.xlu0 %269 }
  0x9d   : > { %v305_v30 = vsub.f32 %v274_v28, %v303_v25  ;;  %v304_v31 = vsub.f32 %v270_v29, %v303_v25  ;;  %v373_v28 = vld [vmem:[#allocation3] sm:$0x1] }
  0x9f   : > { %v313_v36 = vmul.f32 %v305_v30, %v305_v30  ;;  %v312_v37 = vmul.f32 %v304_v31, %v304_v31 }
  0xa0   : > { %v278_v38 = vpop.permute.xlu1 %277  ;;  %v282_v39 = vpop.permute.xlu0 %281 }
  0xa1   : > { %v306_v40 = vsub.f32 %v278_v38, %v303_v25  ;;  %v307_v41 = vsub.f32 %v282_v39, %v303_v25  ;;  %v321_v42 = vadd.f32 %v313_v36, %v261_v35  ;;  %v320_v43 = vadd.f32 %v312_v37, %v260_v33 }
  0xa3   : > { %v314_v48 = vmul.f32 %v306_v40, %v306_v40  ;;  %v315_v49 = vmul.f32 %v307_v41, %v307_v41  ;;  %389 = vmin.xlane.f32.xlu0 %v321_v42  ;;  %387 = vmin.xlane.f32.xlu1 %v320_v43 }
  0xa4   : > { %v286_v50 = vpop.permute.xlu1 %285  ;;  %v290_v51 = vpop.permute.xlu0 %289 }
  0xa5   : > { %v308_v52 = vsub.f32 %v286_v50, %v303_v25  ;;  %v309_v53 = vsub.f32 %v290_v51, %v303_v25  ;;  %v322_v54 = vadd.f32 %v314_v48, %v262_v44  ;;  %v323_v55 = vadd.f32 %v315_v49, %v263_v47 }
  0xa7   : > { %v316_v60 = vmul.f32 %v308_v52, %v308_v52  ;;  %v317_v61 = vmul.f32 %v309_v53, %v309_v53  ;;  %391 = vmin.xlane.f32.xlu0 %v322_v54  ;;  %393 = vmin.xlane.f32.xlu1 %v323_v55 }
  0xa8   : > { %v294_v62 = vpop.permute.xlu1 %293  ;;  %v298_v63 = vpop.permute.xlu0 %297 }
  0xa9   : > { %v310_v0 = vsub.f32 %v294_v62, %v303_v25  ;;  %v311_v1 = vsub.f32 %v298_v63, %v303_v25  ;;  %v324_v2 = vadd.f32 %v316_v60, %v264_v57  ;;  %v325_v3 = vadd.f32 %v317_v61, %v265_v56 }
  0xab   : > { %v318_v6 = vmul.f32 %v310_v0, %v310_v0  ;;  %v319_v7 = vmul.f32 %v311_v1, %v311_v1  ;;  %395 = vmin.xlane.f32.xlu0 %v324_v2  ;;  %397 = vmin.xlane.f32.xlu1 %v325_v3  ;;  %v352_v8 = vmin.f32 %v320_v43, %v324_v2 }
  0xac   : > { %v353_v9 = vmin.f32 %v321_v42, %v325_v3 }
  0xad   : > { %v326_v10 = vadd.f32 %v318_v6, %v266_v5  ;;  %v327_v12 = vadd.f32 %v319_v7, %v267_v4 }
  0xae   : > { %v356_v15 = vmin.f32 %v352_v8, %v353_v9 }
  0xaf   : > { %399 = vmin.xlane.f32.xlu0 %v326_v10  ;;  %v354_v13 = vmin.f32 %v322_v54, %v326_v10  ;;  %401 = vmin.xlane.f32.xlu1 %v327_v12  ;;  %v355_v14 = vmin.f32 %v323_v55, %v327_v12 }
  0xb1   : > { %v357_v16 = vmin.f32 %v354_v13, %v355_v14 }
  0xb3   : > { %v358_v17 = vmin.f32 %v356_v15, %v357_v16 }
  0xb5   : > { %v359_v18 = vrot.slane %v358_v17, 4 }
  0xb7   : > { %v360_v19 = vmin.f32 %v358_v17, %v359_v18 }
  0xb9   : > { %v361_v20 = vrot.slane %v360_v19, 2 }
  0xbb   : > { %v362_v21 = vmin.f32 %v360_v19, %v361_v20 }
  0xbd   : > { %v363_v22 = vrot.slane %v362_v21, 1 }
  0xbf   : > { %v364_v23 = vmin.f32 %v362_v21, %v363_v22 }
  0xc1   : > { %597 = vrsqrt.f32 %v364_v23  ;;  %vm367_vm1 = vcmp.eq.f32.partialorder %v364_v23, inf  ;;  %v370_v27 = vand.u32 2147483648, %v364_v23  ;;  %vm369_vm2 = vcmp.eq.f32.partialorder %v364_v23, 0.0 }
  0xce   : > { %v598_v25 = vpop.eup %597 }
  0xcf   : > { %v366_v26 = vmul.f32 %v598_v25, %v364_v23 }
  0xd1   : > { %v368_v29 = vsel %vm367_vm1, %v364_v23, %v366_v26 }
  0xd2   : > { %v371_v30 = vsel %vm369_vm2, %v370_v27, %v368_v29 }
  0xd3   : > { %v372_v31 = vsel %vm198_vm0, %v371_v30, 0.0 }
  0xd4   : > { %v374_v32 = vadd.f32 %v373_v28, %v372_v31 }
  0xd6   : > { %375 = vst [vmem:[#allocation3] sm:$0x1] %v374_v32 }
  0xdd   : > { %v474_v33 = vld [vmem:[#allocation3] sm:$0x1] }
  0xde   : > { %v476_v34 = vsel %vm475_vm3, %v474_v33, 0.0 }
  0xdf   : > { %477 = vadd.xlane.f32.xlu0 %v476_v34 }
 0x12c   : > { %v388_v35 = vpop.xlane.xlu1 %387  ;;  %v390_v36 = vpop.xlane.xlu0 %389 }
 0x12d   : > { %599 = vrsqrt.f32 %v388_v35  ;;  %vm405_vm4 = vcmp.eq.f32.partialorder %v388_v35, inf  ;;  %v408_v47 = vand.u32 2147483648, %v388_v35  ;;  %vm412_vm5 = vcmp.eq.f32.partialorder %v390_v36, inf }
 0x12e   : > { %601 = vrsqrt.f32 %v390_v36  ;;  %v415_v48 = vand.u32 2147483648, %v390_v36  ;;  %vm407_vm6 = vcmp.eq.f32.partialorder %v388_v35, 0.0  ;;  %vm414_vm7 = vcmp.eq.f32.partialorder %v390_v36, 0.0 }
 0x130   : > { %v394_v11 = vpop.xlane.xlu1 %393  ;;  %v392_v37 = vpop.xlane.xlu0 %391 }
 0x131   : > { %603 = vrsqrt.f32 %v394_v11  ;;  %vm426_vm8 = vcmp.eq.f32.partialorder %v394_v11, inf  ;;  %vm419_vm9 = vcmp.eq.f32.partialorder %v392_v37, inf  ;;  %v422_v56 = vand.u32 2147483648, %v392_v37 }
 0x132   : > { %605 = vrsqrt.f32 %v392_v37  ;;  %vm421_vm10 = vcmp.eq.f32.partialorder %v392_v37, 0.0  ;;  %v429_v62 = vand.u32 2147483648, %v394_v11  ;;  %vm428_vm11 = vcmp.eq.f32.partialorder %v394_v11, 0.0 }
 0x134   : > { %v398_v38 = vpop.xlane.xlu1 %397  ;;  %v396_v39 = vpop.xlane.xlu0 %395 }
 0x135   : > { %607 = vrsqrt.f32 %v398_v38  ;;  %vm440_vm12 = vcmp.eq.f32.partialorder %v398_v38, inf  ;;  %vm433_vm13 = vcmp.eq.f32.partialorder %v396_v39, inf  ;;  %v436_v4 = vand.u32 2147483648, %v396_v39 }
 0x136   : > { %609 = vrsqrt.f32 %v396_v39  ;;  %vm435_vm14 = vcmp.eq.f32.partialorder %v396_v39, 0.0  ;;  %v443_v10 = vand.u32 2147483648, %v398_v38  ;;  %vm442_vm15 = vcmp.eq.f32.partialorder %v398_v38, 0.0 }
 0x138   : > { %v687_v40 = vpop.xlane.xlu1 %401  ;;  %v689_v41 = vpop.xlane.xlu0 %399 }
 0x139   : > { %611 = vrsqrt.f32 %v687_v40  ;;  %vm454_vm0 = vcmp.eq.f32.partialorder %v687_v40, inf  ;;  %vm447_vm1 = vcmp.eq.f32.partialorder %v689_v41, inf  ;;  %v450_v17 = vand.u32 2147483648, %v689_v41 }
 0x13a   : > { %v600_v42 = vpop.eup %599  ;;  %613 = vrsqrt.f32 %v689_v41  ;;  %vm449_vm2 = vcmp.eq.f32.partialorder %v689_v41, 0.0  ;;  %v457_v21 = vand.u32 2147483648, %v687_v40  ;;  %vm456_vm3 = vcmp.eq.f32.partialorder %v687_v40, 0.0 }
 0x13b   : > { %v602_v43 = vpop.eup %601  ;;  %v404_v44 = vmul.f32 %v600_v42, %v388_v35 }
 0x13c   : > { %v411_v45 = vmul.f32 %v602_v43, %v390_v36 }
 0x13d   : > { %v406_v46 = vsel %vm405_vm4, %v388_v35, %v404_v44  ;;  %vm483_vm4 = vcmask 0  }
 0x13e   : > { %v604_v49 = vpop.eup %603  ;;  %v413_v50 = vsel %vm412_vm5, %v390_v36, %v411_v45  ;;  %v409_v52 = vsel %vm407_vm6, %v408_v47, %v406_v46 }
 0x13f   : > { %v606_v51 = vpop.eup %605  ;;  %v416_v53 = vsel %vm414_vm7, %v415_v48, %v413_v50  ;;  %v425_v54 = vmul.f32 %v604_v49, %v394_v11 }
 0x140   : > { %v418_v55 = vmul.f32 %v606_v51, %v392_v37  ;;  %v459_v58 = vadd.f32 %v416_v53, %v409_v52 }
 0x141   : > { %v427_v59 = vsel %vm426_vm8, %v394_v11, %v425_v54 }
 0x142   : > { %v608_v57 = vpop.eup %607  ;;  %v420_v60 = vsel %vm419_vm9, %v392_v37, %v418_v55  ;;  %v430_v3 = vsel %vm428_vm11, %v429_v62, %v427_v59 }
 0x143   : > { %v610_v61 = vpop.eup %609  ;;  %v423_v63 = vsel %vm421_vm10, %v422_v56, %v420_v60  ;;  %v439_v0 = vmul.f32 %v608_v57, %v398_v38 }
 0x144   : > { %v460_v1 = vadd.f32 %v459_v58, %v423_v63  ;;  %v432_v2 = vmul.f32 %v610_v61, %v396_v39 }
 0x145   : > { %v441_v6 = vsel %vm440_vm12, %v398_v38, %v439_v0 }
 0x146   : > { %v612_v5 = vpop.eup %611  ;;  %v461_v7 = vadd.f32 %v460_v1, %v430_v3  ;;  %v434_v8 = vsel %vm433_vm13, %v396_v39, %v432_v2  ;;  %v444_v16 = vsel %vm442_vm15, %v443_v10, %v441_v6 }
 0x147   : > { %v614_v9 = vpop.eup %613  ;;  %v437_v12 = vsel %vm435_vm14, %v436_v4, %v434_v8  ;;  %v453_v13 = vmul.f32 %v612_v5, %v687_v40 }
 0x148   : > { %v462_v14 = vadd.f32 %v461_v7, %v437_v12  ;;  %v446_v15 = vmul.f32 %v614_v9, %v689_v41 }
 0x149   : > { %v455_v18 = vsel %vm454_vm0, %v687_v40, %v453_v13 }
 0x14a   : > { %v448_v19 = vsel %vm447_vm1, %v689_v41, %v446_v15  ;;  %v463_v20 = vadd.f32 %v462_v14, %v444_v16  ;;  %v458_v24 = vsel %vm456_vm3, %v457_v21, %v455_v18 }
 0x14b   : > { %v451_v22 = vsel %vm449_vm2, %v450_v17, %v448_v19 }
 0x14c   : > { %v464_v23 = vadd.f32 %v463_v20, %v451_v22 }
 0x14e   : > { %v465_v25 = vadd.f32 %v464_v23, %v458_v24 }
 0x150   : > { %v466_v26 = vrot.slane %v465_v25, 4 }
 0x152   : > { %v467_v27 = vadd.f32 %v466_v26, %v465_v25 }
 0x154   : > { %v468_v28 = vrot.slane %v467_v27, 2 }
 0x156   : > { %v469_v29 = vadd.f32 %v468_v28, %v467_v27 }
 0x158   : > { %v470_v30 = vrot.slane %v469_v29, 1 }
 0x15a   : > { %v471_v31 = vadd.f32 %v470_v30, %v469_v29 }
 0x15c   : > { %v473_v33 = vmul.f32 0.015625, %v471_v31 }
 0x168   : > { %v478_v32 = vpop.xlane.xlu0 %477 }
 0x169   : > { %v480_v34 = vmul.f32 0.020833334, %v478_v32 }
 0x16b   : > { %v481_v35 = vadd.f32 %v480_v34, %v473_v33 }
 0x16d   : > { %v482_v36 = vmul.f32 0.5, %v481_v35 }
 0x16f   : > { %484 = vst.msk [vmem:[%s179_s23] sm:$0x1] %vm483_vm4, %v482_v36 }
 0x170 PF: > { %s12_s11 = sadd.s32 1, %s637_s11   ;;  %s719_s9 = smov %s633_s10 }
 0x171   : > { %p9_p5 = scmp.ge.s32.totalorder %s12_s11, 4   ;;  %s720_s10 = smov %s722_s12 }
 0x173   :  { %11 = sbr.rel (!%p9_p5) target bundleno = 2 (0x2), region = 69 }

</bundles_post_ra>
